<compile_context>
chip_gen: v7x
topology: tpu7x:2x2x1
jax: 0.10.0
libtpu: 0.0.40
codegen_flags: <defaults>
</compile_context>

<pallas_src>
import functools

import jax
import jax.numpy as jnp
from jax.experimental import pallas as pl
from jax.experimental.pallas import tpu as pltpu

LANE = 128


def mlp_kernel(x_ref, w1_ref, b1_ref, w2_ref, b2_ref, w3_ref, b3_ref, o_ref):
    # Layer 1: Linear (f32 MXU accumulate) -> bf16 bias-add + ReLU (Dropout == identity in eval)
    h = jnp.dot(x_ref[...], w1_ref[...], preferred_element_type=jnp.float32)
    h = jnp.maximum(h.astype(jnp.bfloat16) + b1_ref[...], 0)
    # Layer 2: Linear -> bf16 bias-add + ReLU
    h = jnp.dot(h, w2_ref[...], preferred_element_type=jnp.float32)
    h = jnp.maximum(h.astype(jnp.bfloat16) + b2_ref[...], 0)
    # Output layer: Linear, f32 bias-add, no activation
    out = jnp.dot(h, w3_ref[...], preferred_element_type=jnp.float32) + b3_ref[...]
    o_ref[...] = out.astype(o_ref.dtype)


def _round_up(n, m):
    return ((n + m - 1) // m) * m


def _pad_axis(a, axis, new_size):
    pad = new_size - a.shape[axis]
    if pad == 0:
        return a
    widths = [(0, 0)] * a.ndim
    widths[axis] = (0, pad)
    return jnp.pad(a, widths)


def _choose_tile_b(B):
    """Minimal-grid-step tiling.

    Grid steps are a serial loop on single-TC chips (v5e/v6e), ~0.35us each, which
    dominates this tiny MLP -- so use ONE step whenever the per-step working set is
    small (x tile + f32 out tile + weights << 1 MiB up to ~1024 rows).  For larger
    batches tile at 256 rows (a multiple of 16 for bf16 sublane packing; review: 512
    makes the 512x128xf32 intermediate fill the whole vreg file on v7x)."""
    b16 = _round_up(max(B, 16), 16)
    if b16 <= 1024:
        return b16
    return 256


def prepare_params(params):
    """One-time parameter prep: pad every layer OUTPUT dim to a multiple of 128 lanes
    (zero padding -> mathematically inert) and cast weights / hidden biases to bf16.
    Call once; reuse the result for every forward."""
    (w1, b1), (w2, b2), (w3, b3) = params
    h1p = _round_up(w1.shape[1], LANE)
    h2p = _round_up(w2.shape[1], LANE)
    dop = _round_up(w3.shape[1], LANE)
    prepared = {
        "w1": _pad_axis(w1, 1, h1p).astype(jnp.bfloat16),
        "b1": _pad_axis(b1, 1, h1p).astype(jnp.bfloat16),
        "w2": _pad_axis(_pad_axis(w2, 0, h1p), 1, h2p).astype(jnp.bfloat16),
        "b2": _pad_axis(b2, 1, h2p).astype(jnp.bfloat16),
        "w3": _pad_axis(_pad_axis(w3, 0, h2p), 1, dop).astype(jnp.bfloat16),
        "b3": _pad_axis(b3, 1, dop).astype(jnp.float32),   # final logits bias stays f32
    }
    prepared = {k: jax.device_put(v) for k, v in prepared.items()}
    return prepared, w3.shape[1]


@functools.partial(jax.jit, static_argnames=("num_classes",))
def mlp_forward(x, prepared, num_classes):
    """Fused MLP forward.

    x: [B, input_size] float32.  `prepared`: output of prepare_params.
    Returns [B, num_classes] float32 logits."""
    w1p, b1p = prepared["w1"], prepared["b1"]
    w2p, b2p = prepared["w2"], prepared["b2"]
    w3p, b3p = prepared["w3"], prepared["b3"]

    B, d_in = x.shape
    h1p, h2p, d_out_p = w1p.shape[1], w2p.shape[1], w3p.shape[1]

    tile_b = _choose_tile_b(B)
    b_pad = _round_up(B, tile_b)
    xp = _pad_axis(x, 0, b_pad).astype(jnp.bfloat16)   # no-op pad for common batch sizes

    grid = (b_pad // tile_b,)

    def full2d(_):
        return (0, 0)

    flops = 2 * b_pad * (d_in * h1p + h1p * h2p + h2p * d_out_p)
    bytes_accessed = (
        xp.size * 2
        + (w1p.size + w2p.size + w3p.size) * 2
        + (b1p.size + b2p.size) * 2
        + b3p.size * 4
        + b_pad * d_out_p * 4
    )

    out = pl.pallas_call(
        mlp_kernel,
        out_shape=jax.ShapeDtypeStruct((b_pad, d_out_p), jnp.float32),
        grid_spec=pl.GridSpec(
            grid=grid,
            in_specs=[
                pl.BlockSpec((tile_b, d_in), lambda i: (i, 0)),   # x tiled over batch only
                pl.BlockSpec(w1p.shape, full2d), pl.BlockSpec(b1p.shape, full2d),
                pl.BlockSpec(w2p.shape, full2d), pl.BlockSpec(b2p.shape, full2d),
                pl.BlockSpec(w3p.shape, full2d), pl.BlockSpec(b3p.shape, full2d),
            ],
            out_specs=pl.BlockSpec((tile_b, d_out_p), lambda i: (i, 0)),
        ),
        compiler_params=pltpu.CompilerParams(
            dimension_semantics=("parallel",),
            vmem_limit_bytes=32 * 1024 * 1024,   # usage here is < 2 MiB on all chips
        ),
        cost_estimate=pl.CostEstimate(
            flops=flops, transcendentals=0, bytes_accessed=bytes_accessed
        ),
    )(xp, w1p, b1p, w2p, b2p, w3p, b3p)

    return out[:B, :num_classes]


def init_params(key, input_size, hidden_sizes, num_classes):
    """Deterministic init matching nn.Linear's default U(-1/sqrt(in), 1/sqrt(in)).
    Weights are stored [in, out] (transposed vs. PyTorch) so y = x @ W + b."""
    sizes = [input_size] + list(hidden_sizes) + [num_classes]
    params = []
    for fan_in, fan_out in zip(sizes[:-1], sizes[1:]):
        key, kw, kb = jax.random.split(key, 3)
        bound = 1.0 / (fan_in ** 0.5)
        w = jax.random.uniform(kw, (fan_in, fan_out), jnp.float32, -bound, bound)
        b = jax.random.uniform(kb, (1, fan_out), jnp.float32, -bound, bound)
        params.append((w, b))
    return params


def reference_forward(x, params):
    """Pure-JAX reference mirroring the kernel numerics (bf16 operands / f32 MXU
    accumulation, bf16 bias-add + ReLU on hidden layers, f32 bias on the logits)."""
    (w1, b1), (w2, b2), (w3, b3) = params
    h = x.astype(jnp.bfloat16)
    h = jnp.dot(h, w1.astype(jnp.bfloat16), preferred_element_type=jnp.float32)
    h = jnp.maximum(h.astype(jnp.bfloat16) + b1.astype(jnp.bfloat16), 0)
    h = jnp.dot(h, w2.astype(jnp.bfloat16), preferred_element_type=jnp.float32)
    h = jnp.maximum(h.astype(jnp.bfloat16) + b2.astype(jnp.bfloat16), 0)
    return jnp.dot(h, w3.astype(jnp.bfloat16), preferred_element_type=jnp.float32) + b3


if __name__ == "__main__":
    # Small shapes consistent with NN(input_size=32, hidden_sizes=[64, 32], num_classes=8, 0.1).
    input_size = 32
    hidden_sizes = [64, 32]
    num_classes = 8
    batch = 64   # multiple of 16 -> single grid step, zero batch padding

    key = jax.random.PRNGKey(0)
    key, kx = jax.random.split(key)
    x = jax.random.normal(kx, (batch, input_size), jnp.float32)

    params = init_params(key, input_size, hidden_sizes, num_classes)

    # One-time prep (padding + bf16 casts) hoisted out of the forward path.
    prepared, n_cls = prepare_params(params)
    prepared = jax.tree_util.tree_map(jax.block_until_ready, prepared)

    out = mlp_forward(x, prepared, n_cls)
    out = jax.block_until_ready(out)

    ref = reference_forward(x, params)
    assert out.shape == (batch, num_classes)
    assert jnp.allclose(out, ref, atol=1e-2, rtol=1e-2), "mismatch vs reference"

    print("KERNEL_OK")
</pallas_src>

<mosaic_0001>
module attributes {stable_mosaic.version = 11 : i64} {
  func.func @mlp_kernel(%arg0: i32, %arg1: memref<64x32xbf16, #tpu.memory_space<vmem>>, %arg2: memref<32x128xbf16, #tpu.memory_space<vmem>>, %arg3: memref<1x128xbf16, #tpu.memory_space<vmem>>, %arg4: memref<128x128xbf16, #tpu.memory_space<vmem>>, %arg5: memref<1x128xbf16, #tpu.memory_space<vmem>>, %arg6: memref<128x128xbf16, #tpu.memory_space<vmem>>, %arg7: memref<1x128xf32, #tpu.memory_space<vmem>>, %arg8: memref<64x128xf32, #tpu.memory_space<vmem>>) attributes {dimension_semantics = [#tpu.dimension_semantics<parallel>], iteration_bounds = array<i64: 1>, scalar_prefetch = 0 : i64, scratch_operands = 0 : i64, tpu.core_type = #tpu.core_type<tc>, window_params = [{transform_indices = @transform_0, window_bounds = array<i64: 64, 32>}, {pipeline_mode = #tpu.pipeline_mode<synchronous>, transform_indices = @transform_1, window_bounds = array<i64: 32, 128>}, {pipeline_mode = #tpu.pipeline_mode<synchronous>, transform_indices = @transform_2, window_bounds = array<i64: 1, 128>}, {pipeline_mode = #tpu.pipeline_mode<synchronous>, transform_indices = @transform_3, window_bounds = array<i64: 128, 128>}, {pipeline_mode = #tpu.pipeline_mode<synchronous>, transform_indices = @transform_4, window_bounds = array<i64: 1, 128>}, {pipeline_mode = #tpu.pipeline_mode<synchronous>, transform_indices = @transform_5, window_bounds = array<i64: 128, 128>}, {pipeline_mode = #tpu.pipeline_mode<synchronous>, transform_indices = @transform_6, window_bounds = array<i64: 1, 128>}, {transform_indices = @transform_7, window_bounds = array<i64: 64, 128>}]} {
    %c0 = arith.constant 0 : index
    %c0_0 = arith.constant 0 : index
    %0 = vector.load %arg1[%c0, %c0_0] : memref<64x32xbf16, #tpu.memory_space<vmem>>, vector<64x32xbf16>
    %c0_1 = arith.constant 0 : index
    %c0_2 = arith.constant 0 : index
    %1 = vector.load %arg2[%c0_1, %c0_2] : memref<32x128xbf16, #tpu.memory_space<vmem>>, vector<32x128xbf16>
    %cst = arith.constant dense<0.000000e+00> : vector<64x128xf32>
    %2 = tpu.matmul %0, %1, %cst {dimension_numbers = #tpu.dot_dimension_numbers<[1], [0], [0], [1], [0, 0, 1, 1], [], []>} : vector<64x32xbf16>, vector<32x128xbf16>, vector<64x128xf32> -> vector<64x128xf32>
    %3 = arith.truncf %2 : vector<64x128xf32> to vector<64x128xbf16>
    %c0_3 = arith.constant 0 : index
    %c0_4 = arith.constant 0 : index
    %4 = vector.load %arg3[%c0_3, %c0_4] : memref<1x128xbf16, #tpu.memory_space<vmem>>, vector<1x128xbf16>
    %5 = vector.broadcast %4 : vector<1x128xbf16> to vector<64x128xbf16>
    %6 = arith.addf %3, %5 : vector<64x128xbf16>
    %cst_5 = arith.constant 0.000000e+00 : bf16
    %7 = vector.broadcast %cst_5 : bf16 to vector<64x128xbf16>
    %8 = arith.maximumf %6, %7 : vector<64x128xbf16>
    %c0_6 = arith.constant 0 : index
    %c0_7 = arith.constant 0 : index
    %9 = vector.load %arg4[%c0_6, %c0_7] : memref<128x128xbf16, #tpu.memory_space<vmem>>, vector<128x128xbf16>
    %cst_8 = arith.constant dense<0.000000e+00> : vector<64x128xf32>
    %10 = tpu.matmul %8, %9, %cst_8 {dimension_numbers = #tpu.dot_dimension_numbers<[1], [0], [0], [1], [0, 0, 1, 1], [], []>} : vector<64x128xbf16>, vector<128x128xbf16>, vector<64x128xf32> -> vector<64x128xf32>
    %11 = arith.truncf %10 : vector<64x128xf32> to vector<64x128xbf16>
    %c0_9 = arith.constant 0 : index
    %c0_10 = arith.constant 0 : index
    %12 = vector.load %arg5[%c0_9, %c0_10] : memref<1x128xbf16, #tpu.memory_space<vmem>>, vector<1x128xbf16>
    %13 = vector.broadcast %12 : vector<1x128xbf16> to vector<64x128xbf16>
    %14 = arith.addf %11, %13 : vector<64x128xbf16>
    %cst_11 = arith.constant 0.000000e+00 : bf16
    %15 = vector.broadcast %cst_11 : bf16 to vector<64x128xbf16>
    %16 = arith.maximumf %14, %15 : vector<64x128xbf16>
    %c0_12 = arith.constant 0 : index
    %c0_13 = arith.constant 0 : index
    %17 = vector.load %arg6[%c0_12, %c0_13] : memref<128x128xbf16, #tpu.memory_space<vmem>>, vector<128x128xbf16>
    %cst_14 = arith.constant dense<0.000000e+00> : vector<64x128xf32>
    %18 = tpu.matmul %16, %17, %cst_14 {dimension_numbers = #tpu.dot_dimension_numbers<[1], [0], [0], [1], [0, 0, 1, 1], [], []>} : vector<64x128xbf16>, vector<128x128xbf16>, vector<64x128xf32> -> vector<64x128xf32>
    %c0_15 = arith.constant 0 : index
    %c0_16 = arith.constant 0 : index
    %19 = vector.load %arg7[%c0_15, %c0_16] : memref<1x128xf32, #tpu.memory_space<vmem>>, vector<1x128xf32>
    %20 = vector.broadcast %19 : vector<1x128xf32> to vector<64x128xf32>
    %21 = arith.addf %18, %20 : vector<64x128xf32>
    %c0_17 = arith.constant 0 : index
    %c0_18 = arith.constant 0 : index
    %22 = vector.load %arg8[%c0_17, %c0_18] : memref<64x128xf32, #tpu.memory_space<vmem>>, vector<64x128xf32>
    tpu.vector_store %arg8[%c0_17, %c0_18], %21 {strides = array<i32>} : memref<64x128xf32, #tpu.memory_space<vmem>>, vector<64x128xf32>,
    return
  }
  func.func @transform_0(%arg0: i32) -> (i32, i32) {
    %c0_i32 = arith.constant 0 : i32
    %c0_i32_0 = arith.constant 0 : i32
    return %arg0, %c0_i32 : i32, i32
  }
  func.func @transform_1(%arg0: i32) -> (i32, i32) {
    %c0_i32 = arith.constant 0 : i32
    %c0_i32_0 = arith.constant 0 : i32
    %c0_i32_1 = arith.constant 0 : i32
    return %c0_i32, %c0_i32_0 : i32, i32
  }
  func.func @transform_2(%arg0: i32) -> (i32, i32) {
    %c0_i32 = arith.constant 0 : i32
    %c0_i32_0 = arith.constant 0 : i32
    %c0_i32_1 = arith.constant 0 : i32
    return %c0_i32, %c0_i32_0 : i32, i32
  }
  func.func @transform_3(%arg0: i32) -> (i32, i32) {
    %c0_i32 = arith.constant 0 : i32
    %c0_i32_0 = arith.constant 0 : i32
    %c0_i32_1 = arith.constant 0 : i32
    return %c0_i32, %c0_i32_0 : i32, i32
  }
  func.func @transform_4(%arg0: i32) -> (i32, i32) {
    %c0_i32 = arith.constant 0 : i32
    %c0_i32_0 = arith.constant 0 : i32
    %c0_i32_1 = arith.constant 0 : i32
    return %c0_i32, %c0_i32_0 : i32, i32
  }
  func.func @transform_5(%arg0: i32) -> (i32, i32) {
    %c0_i32 = arith.constant 0 : i32
    %c0_i32_0 = arith.constant 0 : i32
    %c0_i32_1 = arith.constant 0 : i32
    return %c0_i32, %c0_i32_0 : i32, i32
  }
  func.func @transform_6(%arg0: i32) -> (i32, i32) {
    %c0_i32 = arith.constant 0 : i32
    %c0_i32_0 = arith.constant 0 : i32
    %c0_i32_1 = arith.constant 0 : i32
    return %c0_i32, %c0_i32_0 : i32, i32
  }
  func.func @transform_7(%arg0: i32) -> (i32, i32) {
    %c0_i32 = arith.constant 0 : i32
    %c0_i32_0 = arith.constant 0 : i32
    return %arg0, %c0_i32 : i32, i32
  }
}

</mosaic_0001>

<bundles_post_ra>
// kernel: mlp_forward.1
= control target key start
LH: loop header
LB: loop body
LE: loop exit
PB: predicated region body
PF: predicated region fallthrough
CT: control target
= control target key end

     0   :  { %12 = vsyncpa [#allocation3], 0  ;;  %s648_s24 = smov [#allocation2]   ;;  %s783_s0 = inlined_call_operand.vmem [shape: bf16[64,32], index: 0, kind: input, shape index: {}]   ;;  %s784_s1 = inlined_call_operand.vmem [shape: bf16[32,128], index: 1, kind: input, shape index: {}]   ;;  %s785_s2 = inlined_call_operand.vmem [shape: bf16[1,128], index: 2, kind: input, shape index: {}]   ;;  %s786_s3 = inlined_call_operand.vmem [shape: bf16[128,128], index: 3, kind: input, shape index: {}]   ;;  %s787_s4 = inlined_call_operand.vmem [shape: bf16[1,128], index: 4, kind: input, shape index: {}]   ;;  %s788_s5 = inlined_call_operand.hbm [shape: bf16[128,128], index: 5, kind: input, shape index: {}]   ;;  %s789_s6 = inlined_call_operand.vmem [shape: f32[1,128], index: 6, kind: input, shape index: {}]   ;;  %s790_s7 = inlined_call_operand.vmem [shape: f32[64,128], index: 7, kind: output, shape index: {}]  }
   0x1   :  { %s28_s25 = sshll.u32 %s648_s24, 4  ;;  %s624_s28 = scalar_lea.hbm %s788_s5, 1024  ;;  %s29_s25 = int_to_ptr.vmem [resolvable:$true] %s28_s25 }
   0x2   :  { %p625_p0 = scmp.ne.s32.totalorder %s788_s5, %s624_s28  ;;  %p628_p1 = scmp.lt.u32.totalorder %s624_s28, %s788_s5 }
   0x4   :  { %p630_p2 = pnand %p628_p1, %p625_p0 }
   0x6   :  { %633 = shalt.err (!%p630_p2)
}
   0x7   :  { %s634_s10 = scalar_lea.vmem %s29_s25, 1024  ;;  %p639_p4 = scmp.lt.s32.totalorder %s29_s25, %s29_s25 }
   0x8   :  { %p635_p3 = scmp.ne.s32.totalorder %s29_s25, %s634_s10  ;;  %p640_p5 = scmp.lt.s32.totalorder %s634_s10, %s634_s10 }
   0xa   :  { %p641_p6 = por %p640_p5, %p639_p4 }
   0xc   :  { %p642_p7 = pnand %p641_p6, %p635_p3 }
   0xe   :  { %645 = shalt.err (!%p642_p7)
}
   0xf   :  { %s649_s11 = smov 64   ;;  %s650_s12 = smov 4  }
  0x10   :  { %34 = dma.hbm_to_vmem [thread:$0]  %s788_s5, 1024, %s29_s25, [#allocation3], %s649_s11, %s649_s11, %s650_s12  }
  0x11   :  { %646 = dma.done.wait [#allocation3], 1024  }
  0x12   :  { %647 = vsyncadd [#allocation3], 4294966272  ;;  %v602_v0 = vld [vmem:[%s784_s1] sm:$0xff]   ;;  %v603_v1 = vld [vmem:[%s784_s1 + $0x8] sm:$0xff]   ;;  %vm85_vm0 = vcmask 261120   ;;  %v171_v20 = vlaneseq  ;;  %v651_v35 = vmov 0  }
  0x13   :  { %538 = vmatprep.subr.bf16.mxu0 %v602_v0  ;;  %v604_v2 = vld [vmem:[%s783_s0] sm:$0xff]   ;;  %v605_v3 = vld [vmem:[%s783_s0 + $0x8] sm:$0xff]   ;;  %v606_v4 = vld [vmem:[%s783_s0 + $0x10] sm:$0xff]  }
  0x14   :  { %539 = vmatpush3.bf16.msra.mxu0 %v602_v0  ;;  %542 = vmatprep.mubr.msk.bf16.mxu0 %vm85_vm0, %v604_v2  ;;  %v608_v5 = vld [vmem:[%s786_s3] sm:$0xff]   ;;  %v609_v6 = vld [vmem:[%s786_s3 + $0x8] sm:$0xff]   ;;  %v610_v7 = vld [vmem:[%s786_s3 + $0x10] sm:$0xff]   ;;  %v172_v21 = vshrl.u32 %v171_v20, 7 }
  0x15   :  { %540 = vmatprep.subr.bf16.mxu0 %v603_v1  ;;  %550 = vmatprep.subr.bf16.mxu1 %v608_v5  ;;  %v607_v8 = vld [vmem:[%s783_s0 + $0x18] sm:$0xff]   ;;  %v612_v10 = vld [vmem:[%s786_s3 + $0x20] sm:$0xff]   ;;  %v613_v11 = vld [vmem:[%s786_s3 + $0x28] sm:$0xff]  }
  0x16   :  { %551 = vmatpush3.bf16.msra.mxu1 %v608_v5  ;;  %v611_v9 = vld [vmem:[%s786_s3 + $0x18] sm:$0xff]   ;;  %v614_v12 = vld [vmem:[%s786_s3 + $0x30] sm:$0xff]   ;;  %v616_v14 = vld [vmem:[#allocation2] sm:$0xff]   ;;  %v173_v24 = vsub.s32 0, %v172_v21 }
  0x17   :  { %552 = vmatprep.subr.bf16.mxu1 %v609_v6  ;;  %v615_v13 = vld [vmem:[%s786_s3 + $0x38] sm:$0xff]   ;;  %v617_v15 = vld [vmem:[#allocation2 + $0x8] sm:$0xff]   ;;  %v618_v16 = vld [vmem:[#allocation2 + $0x10] sm:$0xff]  }
  0x18   :  { %541 = vmatpush3.bf16.msra.mxu0 %v603_v1  ;;  %v619_v17 = vld [vmem:[#allocation2 + $0x18] sm:$0xff]   ;;  %v620_v18 = vld [vmem:[#allocation2 + $0x20] sm:$0xff]   ;;  %v621_v19 = vld [vmem:[#allocation2 + $0x28] sm:$0xff]  }
  0x19   :  { %574 = vmatprep.subr.bf16.mxu0 %v616_v14  ;;  %v167_v22 = vld [vmem:[%s785_s2] sm:$0x1]  ;;  %v622_v47 = vld [vmem:[#allocation2 + $0x30] sm:$0xff]   ;;  %v623_v48 = vld [vmem:[#allocation2 + $0x38] sm:$0xff]  }
  0x1a   :  { %553 = vmatpush3.bf16.msra.mxu1 %v609_v6  ;;  %v169_v23 = vpack.i.b16 %v167_v22, %v167_v22  ;;  %v316_v49 = vld [vmem:[%s787_s4] sm:$0x1] }
  0x1b   :  { %543 = vmatmul.mubr.msk.bf16.vlgmr.msra.gmra.mrb[0].mxu0 %vm85_vm0, %v605_v3  ;;  %554 = vmatprep.subr.bf16.mxu1 %v610_v7  ;;  %v318_v50 = vpack.i.b16 %v316_v49, %v316_v49 }
  0x1c   :  { %546 = vmatprep.mubr.msk.bf16.mxu0 %vm85_vm0, %v606_v4  ;;  %575 = vmatpush3.bf16.msra.mxu0 %v616_v14  ;;  %v174_v27 = vrot.slane %v169_v23, %v173_v24 }
  0x1d   :  { %576 = vmatprep.subr.bf16.mxu0 %v617_v15  ;;  %v323_v53 = vrot.slane %v318_v50, %v173_v24 }
  0x1e   :  { %555 = vmatpush3.bf16.msra.mxu1 %v610_v7 }
  0x1f   :  { %556 = vmatprep.subr.bf16.mxu1 %v611_v9 }
  0x20   :  { %577 = vmatpush3.bf16.msra.mxu0 %v617_v15 }
  0x21   :  { %578 = vmatprep.subr.bf16.mxu0 %v618_v16 }
  0x22   :  { %557 = vmatpush3.bf16.msra.mxu1 %v611_v9 }
  0x23   :  { %547 = vmatmul.mubr.msk.bf16.gmra.mrb[4].mxu0 %vm85_vm0, %v607_v8  ;;  %558 = vmatprep.subr.bf16.mxu1 %v612_v10  ;;  %v499_v8 = vld [vmem:[%s789_s6] ss:$0 sm:$0xff] }
  0x24   :  { %579 = vmatpush3.bf16.msra.mxu0 %v618_v16 }
  0x25   :  { %580 = vmatprep.subr.bf16.mxu0 %v619_v17 }
  0x26   :  { %559 = vmatpush3.bf16.msra.mxu1 %v612_v10 }
  0x27   :  { %560 = vmatprep.subr.bf16.mxu1 %v613_v11 }
  0x28   :  { %581 = vmatpush3.bf16.msra.mxu0 %v619_v17 }
  0x29   :  { %582 = vmatprep.subr.bf16.mxu0 %v620_v18 }
  0x2a   :  { %561 = vmatpush3.bf16.msra.mxu1 %v613_v11 }
  0x2b   :  { %562 = vmatprep.subr.bf16.mxu1 %v614_v12 }
  0x2c   :  { %583 = vmatpush3.bf16.msra.mxu0 %v620_v18 }
  0x2d   :  { %584 = vmatprep.subr.bf16.mxu0 %v621_v19 }
  0x2e   :  { %563 = vmatpush3.bf16.msra.mxu1 %v614_v12 }
  0x2f   :  { %564 = vmatprep.subr.bf16.mxu1 %v615_v13 }
  0x30   :  { %585 = vmatpush3.bf16.msra.mxu0 %v621_v19 }
  0x31   :  { %586 = vmatprep.subr.bf16.mxu0 %v622_v47 }
  0x32   :  { %565 = vmatpush3.bf16.msra.mxu1 %v615_v13 }
  0x34   :  { %587 = vmatpush3.bf16.msra.mxu0 %v622_v47 }
  0x35   :  { %588 = vmatprep.subr.bf16.mxu0 %v623_v48 }
  0x38   :  { %589 = vmatpush3.bf16.msra.mxu0 %v623_v48 }
  0xee   :  { %v544_v25 = vpop.f32.mrb[0].mxu0 }
  0xef   :  { %v132_v26 = vpop.f32.mrb[1].mxu0 }
  0xf0   :  { %v545_v28 = vpop.f32.mrb[2].mxu0 }
  0xf1   :  { %v164_v29 = vpack.c.bf16 %v545_v28, %v544_v25  ;;  %v135_v30 = vpop.f32.mrb[3].mxu0 }
  0xf2   :  { %v163_v31 = vpack.c.bf16 %v135_v30, %v132_v26 }
  0xf3   :  { %v176_v32 = vadd.bf16 %v174_v27, %v164_v29 }
  0xf4   :  { %v175_v33 = vadd.bf16 %v174_v27, %v163_v31 }
  0xf5   :  { %v180_v38 = vmax.bf16 %v651_v35, %v176_v32 }
  0xf6   :  { %v548_v34 = vpop.f32.mrb[4].mxu0  ;;  %v179_v36 = vmax.bf16 %v651_v35, %v175_v33 }
  0xf7   :  { %v148_v37 = vpop.f32.mrb[5].mxu0 }
  0xf8   :  { %v549_v39 = vpop.f32.mrb[6].mxu0  ;;  %566 = vmatprep.mubr.bf16.mxu1 %v179_v36 }
  0xf9   :  { %v166_v40 = vpack.c.bf16 %v549_v39, %v548_v34  ;;  %v151_v41 = vpop.f32.mrb[7].mxu0  ;;  %567 = vmatmul.mubr.bf16.vlgmr.msra.gmra.mrb[0].mxu1 %v180_v38 }
  0xfa   :  { %v165_v42 = vpack.c.bf16 %v151_v41, %v148_v37 }
  0xfb   :  { %v178_v43 = vadd.bf16 %v174_v27, %v166_v40 }
  0xfc   :  { %v177_v44 = vadd.bf16 %v174_v27, %v165_v42 }
  0xfd   :  { %v182_v46 = vmax.bf16 %v651_v35, %v178_v43 }
  0xfe   :  { %v181_v45 = vmax.bf16 %v651_v35, %v177_v44 }
 0x100   :  { %570 = vmatprep.mubr.bf16.mxu1 %v181_v45 }
 0x101   :  { %571 = vmatmul.mubr.bf16.gmra.mrb[4].mxu1 %v182_v46 }
 0x1cc   :  { %v568_v51 = vpop.f32.mrb[0].mxu1 }
 0x1cd   :  { %v281_v52 = vpop.f32.mrb[1].mxu1 }
 0x1ce   :  { %v569_v54 = vpop.f32.mrb[2].mxu1 }
 0x1cf   :  { %v313_v55 = vpack.c.bf16 %v569_v54, %v568_v51  ;;  %v284_v56 = vpop.f32.mrb[3].mxu1 }
 0x1d0   :  { %v312_v57 = vpack.c.bf16 %v284_v56, %v281_v52 }
 0x1d1   :  { %v325_v58 = vadd.bf16 %v323_v53, %v313_v55 }
 0x1d2   :  { %v324_v59 = vadd.bf16 %v323_v53, %v312_v57 }
 0x1d3   :  { %v329_v62 = vmax.bf16 %v651_v35, %v325_v58 }
 0x1d4   :  { %v572_v60 = vpop.f32.mrb[4].mxu1  ;;  %v328_v61 = vmax.bf16 %v651_v35, %v324_v59 }
 0x1d5   :  { %v297_v63 = vpop.f32.mrb[5].mxu1 }
 0x1d6   :  { %v573_v0 = vpop.f32.mrb[6].mxu1  ;;  %590 = vmatprep.mubr.bf16.mxu0 %v328_v61 }
 0x1d7   :  { %v315_v1 = vpack.c.bf16 %v573_v0, %v572_v60  ;;  %v300_v2 = vpop.f32.mrb[7].mxu1  ;;  %591 = vmatmul.mubr.bf16.vlgmr.msra.gmra.mrb[8].mxu0 %v329_v62 }
 0x1d8   :  { %v314_v3 = vpack.c.bf16 %v300_v2, %v297_v63 }
 0x1d9   :  { %v327_v4 = vadd.bf16 %v323_v53, %v315_v1 }
 0x1da   :  { %v326_v5 = vadd.bf16 %v323_v53, %v314_v3 }
 0x1db   :  { %v331_v7 = vmax.bf16 %v651_v35, %v327_v4 }
 0x1dc   :  { %v330_v6 = vmax.bf16 %v651_v35, %v326_v5 }
 0x1de   :  { %594 = vmatprep.mubr.bf16.mxu0 %v330_v6 }
 0x1df   :  { %595 = vmatmul.mubr.bf16.gmra.mrb[12].mxu0 %v331_v7 }
 0x2aa   :  { %v592_v9 = vpop.f32.mrb[8].mxu0 }
 0x2ab   :  { %v446_v10 = vadd.f32 %v592_v9, %v499_v8  ;;  %v437_v11 = vpop.f32.mrb[9].mxu0 }
 0x2ac   :  { %v438_v12 = vadd.f32 %v499_v8, %v437_v11  ;;  %v593_v13 = vpop.f32.mrb[10].mxu0 }
 0x2ad   :  { %470 = vst [vmem:[%s790_s7 + $0x10] sm:$0xff] %v446_v10  ;;  %v449_v14 = vadd.f32 %v593_v13, %v499_v8  ;;  %v440_v15 = vpop.f32.mrb[11].mxu0 }
 0x2ae   :  { %468 = vst [vmem:[%s790_s7] sm:$0xff] %v438_v12  ;;  %v441_v16 = vadd.f32 %v499_v8, %v440_v15 }
 0x2af   :  { %471 = vst [vmem:[%s790_s7 + $0x18] sm:$0xff] %v449_v14 }
 0x2b0   :  { %469 = vst [vmem:[%s790_s7 + $0x8] sm:$0xff] %v441_v16 }
 0x2b2   :  { %v596_v17 = vpop.f32.mrb[12].mxu0 }
 0x2b3   :  { %v462_v18 = vadd.f32 %v596_v17, %v499_v8  ;;  %v453_v19 = vpop.f32.mrb[13].mxu0 }
 0x2b4   :  { %v454_v20 = vadd.f32 %v499_v8, %v453_v19  ;;  %v597_v21 = vpop.f32.mrb[14].mxu0 }
 0x2b5   :  { %474 = vst [vmem:[%s790_s7 + $0x30] sm:$0xff] %v462_v18  ;;  %v465_v22 = vadd.f32 %v597_v21, %v499_v8  ;;  %v456_v23 = vpop.f32.mrb[15].mxu0 }
 0x2b6   :  { %472 = vst [vmem:[%s790_s7 + $0x20] sm:$0xff] %v454_v20  ;;  %v457_v24 = vadd.f32 %v499_v8, %v456_v23 }
 0x2b7   :  { %475 = vst [vmem:[%s790_s7 + $0x38] sm:$0xff] %v465_v22 }
 0x2b8   :  { %473 = vst [vmem:[%s790_s7 + $0x28] sm:$0xff] %v457_v24 }
 0x2b9   :  { %480 = vsyncpa [#allocation3], 1 }

</bundles_post_ra>
